<compile_context>
chip_gen: v6e
topology: v6e:2x2x1
jax: 0.10.0
libtpu: 0.0.40
codegen_flags: <defaults>
</compile_context>

<pallas_src>
import functools

import jax
import jax.numpy as jnp
from jax.experimental import pallas as pl
from jax.experimental.pallas import tpu as pltpu

# ---- model hyperparameters (the PyTorch module's globals) ----
A_DIM, AX_DIM, X_DIM = 8, 8, 16
IN_DIM = A_DIM + AX_DIM + X_DIM          # 32 input features
C_HIDDEN_DIM = [64, 64]
PARAM_DIM = 8
# dropout_p = 0.0 -> identity at inference; nothing to do in the kernel.

LANE = 128                                # TPU vreg lane width (pad feature dims to this)


def _round_up(x, m):
    return ((x + m - 1) // m) * m


def _mlp_kernel(z_ref, w_ref, o_ref, *, d0p, h1p, h2p, compute_dtype):
    """relu(relu(z@W1)@W2)@W3 on one (TM, LANE)-padded batch tile.

    `w_ref` is a single packed slab [W1p; W2p; W3p]. Its index_map is constant
    across the batch grid, so the weights are DMA'd exactly once per pallas_call
    and stay resident in VMEM while every batch tile streams through.
    """
    w1 = w_ref[0:d0p, :]                              # static slices
    w2 = w_ref[d0p:d0p + h1p, :]
    w3 = w_ref[d0p + h1p:d0p + h1p + h2p, :]

    h = jnp.dot(z_ref[...], w1, preferred_element_type=jnp.float32)
    h = jnp.maximum(h, 0.0)                           # e_relu1
    h = jnp.dot(h.astype(compute_dtype), w2, preferred_element_type=jnp.float32)
    h = jnp.maximum(h, 0.0)                           # e_relu2 (+ e_dropout2, p=0.0 -> identity)
    out = jnp.dot(h.astype(compute_dtype), w3, preferred_element_type=jnp.float32)
    o_ref[...] = out.astype(o_ref.dtype)


def c_model_forward(z, w1, w2, w3, *, tm=128, compute_dtype=jnp.float32):
    """Batched forward pass. Weights are (in, out), i.e. PyTorch weight.T."""
    B, D0 = z.shape
    H1 = w1.shape[1]
    H2 = w2.shape[1]
    P = w3.shape[1]
    assert w1.shape == (D0, H1) and w2.shape == (H1, H2) and w3.shape == (H2, P)

    # Lane-dense padded feature dims.
    d0p = _round_up(D0, LANE)
    h1p = _round_up(H1, LANE)
    h2p = _round_up(H2, LANE)
    pp = _round_up(P, LANE)
    # For this model every padded out-dim is exactly one lane group (128), which
    # lets all three weights share a single (rows, 128) slab.
    assert h1p == h2p == pp == LANE

    # Zero-pad weights (padded rows/cols contribute exactly zero) and pack into one slab.
    w1p = jnp.zeros((d0p, LANE), compute_dtype).at[:D0, :H1].set(w1.astype(compute_dtype))
    w2p = jnp.zeros((h1p, LANE), compute_dtype).at[:H1, :H2].set(w2.astype(compute_dtype))
    w3p = jnp.zeros((h2p, LANE), compute_dtype).at[:H2, :P].set(w3.astype(compute_dtype))
    w_slab = jnp.concatenate([w1p, w2p, w3p], axis=0)   # (d0p+h1p+h2p, 128): one DMA

    # Batch tiling: shrink the tile for tiny batches, otherwise 128-row MXU-friendly tiles.
    tm = max(8, min(tm, _round_up(B, 8)))
    bp = _round_up(B, tm)
    nb = bp // tm
    zp = jnp.zeros((bp, d0p), compute_dtype).at[:B, :D0].set(z.astype(compute_dtype))

    kernel = functools.partial(
        _mlp_kernel, d0p=d0p, h1p=h1p, h2p=h2p, compute_dtype=compute_dtype)

    out_padded = pl.pallas_call(
        kernel,
        out_shape=jax.ShapeDtypeStruct((bp, LANE), jnp.float32),
        grid=(nb,),
        in_specs=[
            pl.BlockSpec((tm, d0p), lambda i: (i, 0)),                  # batch tile of z
            pl.BlockSpec((d0p + h1p + h2p, LANE), lambda i: (0, 0)),    # weight slab, VMEM-resident
        ],
        out_specs=pl.BlockSpec((tm, LANE), lambda i: (i, 0)),           # lane-dense output
        compiler_params=pltpu.CompilerParams(
            # Batch tiles are independent -> let megacore (v7x) split them across TCs.
            dimension_semantics=("parallel",)),
    )(zp, w_slab)

    return out_padded[:B, :P]


def reference_forward(z, w1, w2, w3):
    h = jnp.maximum(z @ w1, 0.0)
    h = jnp.maximum(h @ w2, 0.0)
    return h @ w3


if __name__ == "__main__":
    key = jax.random.PRNGKey(0)
    k_z, k_w1, k_w2, k_w3 = jax.random.split(key, 4)

    # Batched inputs (amortizes launch/DMA overhead; grid = 256/128 = 2 tiles).
    batch = 256
    z = jax.random.normal(k_z, (batch, IN_DIM), dtype=jnp.float32)
    w1 = jax.random.normal(k_w1, (IN_DIM, C_HIDDEN_DIM[0]), dtype=jnp.float32) * 0.1
    w2 = jax.random.normal(k_w2, (C_HIDDEN_DIM[0], C_HIDDEN_DIM[1]), dtype=jnp.float32) * 0.1
    w3 = jax.random.normal(k_w3, (C_HIDDEN_DIM[1], PARAM_DIM), dtype=jnp.float32) * 0.1

    ref = reference_forward(z, w1, w2, w3)

    # f32 compute path (tight tolerance).
    out = jax.block_until_ready(c_model_forward(z, w1, w2, w3, compute_dtype=jnp.float32))
    assert out.shape == (batch, PARAM_DIM)
    assert jnp.allclose(out, ref, atol=1e-4, rtol=1e-4), "f32 kernel mismatch vs reference"

    # bf16 compute path (halves weight/activation bytes, f32 MXU accumulation) - looser tol.
    out_bf16 = jax.block_until_ready(c_model_forward(z, w1, w2, w3, compute_dtype=jnp.bfloat16))
    assert jnp.allclose(out_bf16, ref, atol=5e-2, rtol=5e-2), "bf16 kernel mismatch vs reference"

    # Original tiny batch (B=8) from the module still works (tile shrinks to 8 rows).
    out_small = jax.block_until_ready(c_model_forward(z[:8], w1, w2, w3))
    assert out_small.shape == (8, PARAM_DIM)
    assert jnp.allclose(out_small, ref[:8], atol=1e-4, rtol=1e-4), "small-batch mismatch"

    print("KERNEL_OK")
</pallas_src>

<mosaic_0001>
module attributes {stable_mosaic.version = 11 : i64} {
  func.func @_mlp_kernel(%arg0: i32, %arg1: memref<128x128xf32, #tpu.memory_space<vmem>>, %arg2: memref<384x128xf32, #tpu.memory_space<vmem>>, %arg3: memref<128x128xf32, #tpu.memory_space<vmem>>) attributes {dimension_semantics = [#tpu.dimension_semantics<parallel>], iteration_bounds = array<i64: 2>, scalar_prefetch = 0 : i64, scratch_operands = 0 : i64, tpu.core_type = #tpu.core_type<tc>, window_params = [{transform_indices = @transform_0, window_bounds = array<i64: 128, 128>}, {pipeline_mode = #tpu.pipeline_mode<synchronous>, transform_indices = @transform_1, window_bounds = array<i64: 384, 128>}, {transform_indices = @transform_2, window_bounds = array<i64: 128, 128>}]} {
    %c0 = arith.constant 0 : index
    %c0_0 = arith.constant 0 : index
    %0 = vector.load %arg2[%c0, %c0_0] : memref<384x128xf32, #tpu.memory_space<vmem>>, vector<128x128xf32>
    %c128 = arith.constant 128 : index
    %c0_1 = arith.constant 0 : index
    %1 = vector.load %arg2[%c128, %c0_1] : memref<384x128xf32, #tpu.memory_space<vmem>>, vector<128x128xf32>
    %c256 = arith.constant 256 : index
    %c0_2 = arith.constant 0 : index
    %2 = vector.load %arg2[%c256, %c0_2] : memref<384x128xf32, #tpu.memory_space<vmem>>, vector<128x128xf32>
    %c0_3 = arith.constant 0 : index
    %c0_4 = arith.constant 0 : index
    %3 = vector.load %arg1[%c0_3, %c0_4] : memref<128x128xf32, #tpu.memory_space<vmem>>, vector<128x128xf32>
    %cst = arith.constant dense<0.000000e+00> : vector<128x128xf32>
    %4 = tpu.matmul %3, %0, %cst {dimension_numbers = #tpu.dot_dimension_numbers<[1], [0], [0], [1], [0, 0, 1, 1], [], []>} : vector<128x128xf32>, vector<128x128xf32>, vector<128x128xf32> -> vector<128x128xf32>
    %cst_5 = arith.constant 0.000000e+00 : f32
    %5 = vector.broadcast %cst_5 : f32 to vector<128x128xf32>
    %6 = arith.maximumf %4, %5 : vector<128x128xf32>
    %cst_6 = arith.constant dense<0.000000e+00> : vector<128x128xf32>
    %7 = tpu.matmul %6, %1, %cst_6 {dimension_numbers = #tpu.dot_dimension_numbers<[1], [0], [0], [1], [0, 0, 1, 1], [], []>} : vector<128x128xf32>, vector<128x128xf32>, vector<128x128xf32> -> vector<128x128xf32>
    %cst_7 = arith.constant 0.000000e+00 : f32
    %8 = vector.broadcast %cst_7 : f32 to vector<128x128xf32>
    %9 = arith.maximumf %7, %8 : vector<128x128xf32>
    %cst_8 = arith.constant dense<0.000000e+00> : vector<128x128xf32>
    %10 = tpu.matmul %9, %2, %cst_8 {dimension_numbers = #tpu.dot_dimension_numbers<[1], [0], [0], [1], [0, 0, 1, 1], [], []>} : vector<128x128xf32>, vector<128x128xf32>, vector<128x128xf32> -> vector<128x128xf32>
    %c0_9 = arith.constant 0 : index
    %c0_10 = arith.constant 0 : index
    %11 = vector.load %arg3[%c0_9, %c0_10] : memref<128x128xf32, #tpu.memory_space<vmem>>, vector<128x128xf32>
    tpu.vector_store %arg3[%c0_9, %c0_10], %10 {strides = array<i32>} : memref<128x128xf32, #tpu.memory_space<vmem>>, vector<128x128xf32>,
    return
  }
  func.func @transform_0(%arg0: i32) -> (i32, i32) {
    %c0_i32 = arith.constant 0 : i32
    %c0_i32_0 = arith.constant 0 : i32
    return %arg0, %c0_i32 : i32, i32
  }
  func.func @transform_1(%arg0: i32) -> (i32, i32) {
    %c0_i32 = arith.constant 0 : i32
    %c0_i32_0 = arith.constant 0 : i32
    %c0_i32_1 = arith.constant 0 : i32
    return %c0_i32, %c0_i32_0 : i32, i32
  }
  func.func @transform_2(%arg0: i32) -> (i32, i32) {
    %c0_i32 = arith.constant 0 : i32
    %c0_i32_0 = arith.constant 0 : i32
    return %arg0, %c0_i32 : i32, i32
  }
}

</mosaic_0001>

<bundles_post_ra>
// kernel: tpu_custom_call.1
= control target key start
LH: loop header
LB: loop body
LE: loop exit
PB: predicated region body
PF: predicated region fallthrough
CT: control target
= control target key end

     0   :  { %7 = vsyncpa [#allocation3], 0  ;;  %s1604_s0 = inlined_call_operand.hbm [shape: f32[256,128], index: 0, kind: input, shape index: {}]   ;;  %s1605_s1 = inlined_call_operand.hbm [shape: f32[384,128], index: 1, kind: input, shape index: {}]   ;;  %s1606_s2 = inlined_call_operand.hbm [shape: f32[256,128], index: 2, kind: output, shape index: {}]  }
   0x1   :  { %9 = vsyncpa [#allocation3 + $0x1], 0 }
   0x2   :  { %10 = vsyncpa [#allocation6], 0 }
   0x3   :  { %11 = vsyncpa [#allocation4], 0 }
   0x4   :  { %13 = vsyncpa [#allocation4 + $0x1], 0  ;;  %s1344_s9 = smov 0   ;;  %s1346_s10 = smov 0  }
   0x5   :  { %s1348_s11 = smov 0   ;;  %s1350_s12 = smov 0  }
   0x6 LB: > { %s1365_s13 = sadd.s32 4294967295, %s1320_s12   ;;  %s823_s14 = sadd.s32 4294967294, %s1320_s12   ;;  %s1320_s12 = sphi %s1350_s12, %s1628_s12   ;;  %s1316_s11 = sphi %s1348_s11, %s1627_s11   ;;  %s1312_s10 = sphi %s1346_s10, %s1626_s10   ;;  %s1308_s9 = sphi %s1344_s9, %s1625_s9  }
   0x7   : > { %p39_p0 = scmp.ne.s32.totalorder %s1312_s10, %s1308_s9  ;;  %p1607_p1 = scmp.eq.s32.totalorder %s1365_s13, 0 }
   0x8   : > { %p90_p3 = scmp.eq.s32.totalorder %s823_s14, 1  ;;  %p824_p5 = scmp.ge.s32.totalorder %s1320_s12, 1 }
   0x9   : > { %p1374_p4 = por %p1607_p1, %p39_p0  ;;  %p97_p7 = scmp.lt.s32.totalorder %s1320_s12, 3 }
   0xa   : > { %p1379_p6 = por %p90_p3, %p39_p0  ;;  %s1322_s18 = smov [#allocation5]  }
   0xb   : > { %s1611_s15 = scalar_select %p1374_p4, 1, 0 }
   0xc   : > { %s1612_s16 = scalar_select %p1379_p6, 1, 0 }
   0xd   : > { %p1384_p8 = pnand %p824_p5, %p97_p7  ;;  %s109_s19 = sshll.u32 %s1322_s18, 4  ;;  %s110_s19 = int_to_ptr.vmem [resolvable:$true] %s109_s19 }
   0xe   : > { %s1398_s21 = sadd.s32 1, %s1320_s12   ;;  %s26_s22 = sadd.s32 1, %s1316_s11 }
   0xf   : > { %s1613_s17 = scalar_select %p1384_p8, 1, 0 }
  0x10   : > { %p1145_p9 = pneg %p1384_p8  ;;  %s23_s23 = ssub.s32 %s1320_s12, %s1398_s21 }
  0x11   : > { %s1209_s24 = scalar_lea.vmem %s110_s19, 6144  ;;  %p1217_p5 = scmp.lt.s32.totalorder %s110_s19, %s110_s19 }
  0x12   : > { %p1393_p11 = pnand %p1145_p9, %p1607_p1  ;;  %p1210_p13 = scmp.ne.s32.totalorder %s110_s19, %s1209_s24 }
  0x13   : > { %p1218_p7 = scmp.lt.s32.totalorder %s1209_s24, %s1209_s24 }
  0x14   : > { %p1200_p12 = pneg %p1393_p11 }
  0x15   : > { %p1219_p10 = por %p1218_p7, %p1217_p5 }
  0x16   : > { %p1212_p0 = pnand %p1210_p13, %p1200_p12 }
  0x18   : > { %p1213_p3 = pneg %p1212_p0 }
  0x1a   : > { %p1220_p2 = pnand %p1219_p10, %p1213_p3 }
  0x1c   : > { %1223 = shalt.err (!%p1220_p2)
}
  0x1d   : > { %s1323_s25 = smov 128   ;;  %s1324_s26 = smov 8  }
  0x1e   : > { %1148 = dma.hbm_to_vmem [thread:$0]  (!%p1393_p11), %s1605_s1, 6144, %s110_s19, [#allocation6], %s1323_s25, %s1323_s25, %s1324_s26  }
  0x1f   : > { %p24_p2 = scmp.eq.s32.totalorder %s23_s23, 0  ;;  %p33_p9 = scmp.ne.s32.totalorder %s1316_s11, %s1312_s10 }
  0x20   : > { %p34_p10 = scmp.eq.s32.totalorder %s1320_s12, 0  ;;  %p1158_p12 = scmp.lt.s32.totalorder %s1320_s12, 2 }
  0x21   : > { %s1418_s29 = scalar_select %p24_p2, %s1316_s11, %s26_s22  }
  0x22   : > { %p35_p13 = por %p34_p10, %p33_p9  ;;  %p1615_p0 = scmp.eq.s32.totalorder %s1365_s13, 1 }
  0x23   : > { %s123_s3 = sand.u32 1, %s1316_s11   ;;  %s839_s4 = sshll.u32 %s1320_s12, 11 }
  0x24   : > { %p1422_p3 = por %p1615_p0, %p33_p9  ;;  %s827_s5 = sshll.u32 %s123_s3, 7 }
  0x25   : > { %s1431_s8 = scalar_lea.hbm %s1604_s0, %s839_s4  ;;  %s127_s14 = scalar_lea.vmem [#allocation2], %s827_s5 }
  0x26   : > { %s1616_s30 = scalar_select %p1422_p3, 1, 0 }
  0x27   : > { %s134_s18 = sshll.u32 %s127_s14, 4  ;;  %p1433_p11 = pnand %p1158_p12, %p35_p13  ;;  %s1437_s18 = int_to_ptr.vmem [resolvable:$true] %s134_s18 }
  0x28   : > { %s1439_s20 = scalar_lea.sflag [#allocation3], %s123_s3  ;;  %s1224_s22 = scalar_lea.hbm %s1431_s8, 2048 }
  0x29   : > { %p1225_p5 = scmp.ne.s32.totalorder %s1431_s8, %s1224_s22  ;;  %p1226_p7 = pneg %p1433_p11 }
  0x2a   : > { %s1229_s27 = scalar_lea.hbm %s1604_s0, 4096  ;;  %p1230_p10 = scmp.lt.s32.totalorder %s1431_s8, %s1604_s0 }
  0x2b   : > { %p1227_p2 = pnand %p1226_p7, %p1225_p5  ;;  %p1231_p12 = scmp.lt.s32.totalorder %s1229_s27, %s1224_s22 }
  0x2d   : > { %p1228_p9 = pneg %p1227_p2  ;;  %p1232_p13 = por %p1231_p12, %p1230_p10 }
  0x2f   : > { %p1233_p0 = pnand %p1232_p13, %p1228_p9 }
  0x31   : > { %1236 = shalt.err (!%p1233_p0)
}
  0x32   : > { %s1237_s3 = scalar_lea.vmem %s1437_s18, 2048  ;;  %s1325_s5 = smov [#allocation2]  }
  0x33   : > { %p1238_p1 = scmp.ne.s32.totalorder %s1437_s18, %s1237_s3  ;;  %s1242_s6 = sshll.u32 %s1325_s5, 4  ;;  %s1243_s6 = int_to_ptr.vmem [resolvable:$false] %s1242_s6 }
  0x34   : > { %s1244_s7 = scalar_lea.vmem %s1243_s6, 4096  ;;  %p1245_p2 = scmp.lt.s32.totalorder %s1437_s18, %s1243_s6 }
  0x35   : > { %p1240_p6 = pnand %p1238_p1, %p1226_p7  ;;  %p1246_p3 = scmp.lt.s32.totalorder %s1244_s7, %s1237_s3 }
  0x37   : > { %p1241_p5 = pneg %p1240_p6  ;;  %p1247_p4 = por %p1246_p3, %p1245_p2 }
  0x39   : > { %p1248_p8 = pnand %p1247_p4, %p1241_p5 }
  0x3b   : > { %1251 = shalt.err (!%p1248_p8)
}
  0x3c   : > { %1152 = dma.hbm_to_vmem [thread:$0]  (!%p1433_p11), %s1431_s8, 2048, %s1437_s18, %s1439_s20, %s1323_s25, %s1323_s25, %s1324_s26  }
  0x3d   : > { %p1618_p1 = scmp.ne.s32.totalorder %s1613_s17, 0 }
  0x3e   : > { %s1466_s14 = sand.u32 (!%p1618_p1), 1, %s1312_s10   ;;  %p1619_p4 = scmp.ne.s32.totalorder (!%p1618_p1), %s1611_s15, 0 }
  0x3f   : > { %146 = sbr.rel (%p1618_p1) target bundleno = 738 (0x2e2), region = 28  ;;  %s831_s22 = sshll.u32 (!%p1618_p1), %s1466_s14, 7 }
  0x40   : > { %s149_s23 = scalar_lea.sflag (!%p1618_p1), [#allocation3], %s1466_s14  ;;  %s1472_s19 = scalar_lea.vmem (!%p1618_p1), [#allocation2], %s831_s22 }
  0x44   : > { %1295 = dma.done.wait (%p1619_p4), %s149_s23, 2048  }
  0x45   : > { %1297 = vsyncadd (%p1619_p4), %s149_s23, 4294965248  ;;  %p1620_p6 = scmp.eq.s32.totalorder %s1365_s13, 0 }
  0x47   : > { %1299 = dma.done.wait (%p1620_p6), [#allocation6], 6144   ;;  %p1621_p8 = pmov %p1620_p6 }
  0x48   : > { %v194_v0 = vld [vmem:[#allocation5 + $0x78] sm:$0xff]  ;;  %v193_v1 = vld [vmem:[#allocation5 + $0x70] sm:$0xff]  ;;  %v192_v2 = vld [vmem:[#allocation5 + $0x68] sm:$0xff]  ;;  %s1536_s15 = scalar_lea.vmem [#allocation7], %s831_s22  ;;  %s840_s17 = sshll.u32 %s1365_s13, 11 }
  0x49   : > { %1301 = vsyncadd (%p1621_p8), [#allocation6], 4294961152  ;;  %937 = vmatprep.subr.mxu0 %v194_v0  ;;  %v191_v3 = vld [vmem:[#allocation5 + $0x60] sm:$0xff]  ;;  %v190_v5 = vld [vmem:[#allocation5 + $0x58] sm:$0xff]  ;;  %s740_s25 = sshll.u32 %s1536_s15, 4  ;;  %s1557_s18 = scalar_lea.hbm %s1606_s2, %s840_s17  ;;  %s1559_s25 = int_to_ptr.vmem [resolvable:$true] %s740_s25 }
  0x4a   : > { %938 = vmatpush3.msra.mxu0 %v194_v0  ;;  %v227_v4 = vld [vmem:[%s1472_s19] sm:$0xff]  ;;  %v189_v6 = vld [vmem:[#allocation5 + $0x50] sm:$0xff]  ;;  %v188_v7 = vld [vmem:[#allocation5 + $0x48] sm:$0xff]  ;;  %s727_s20 = scalar_lea.sflag [#allocation4], %s1466_s14  ;;  %s1252_s24 = scalar_lea.vmem %s1559_s25, 2048 }
  0x4b   : > { %939 = vmatprep.subr.mxu0 %v193_v1  ;;  %969 = vmatprep.mubr.f32.mxu0 %v227_v4  ;;  %v210_v8 = vld [vmem:[#allocation5 + $0xf8] sm:$0xff]  ;;  %v209_v9 = vld [vmem:[#allocation5 + $0xf0] sm:$0xff]  ;;  %v187_v10 = vld [vmem:[#allocation5 + $0x40] sm:$0xff]  ;;  %p1253_p3 = scmp.ne.s32.totalorder %s1559_s25, %s1252_s24  ;;  %p1622_p11 = scmp.ne.s32.totalorder %s1616_s30, 0 }
  0x4c   : > { %940 = vmatpush3.msra.mxu0 %v193_v1  ;;  %993 = vmatprep.subr.mxu1 %v210_v8  ;;  %v208_v11 = vld [vmem:[#allocation5 + $0xe8] sm:$0xff]  ;;  %v186_v12 = vld [vmem:[#allocation5 + $0x38] sm:$0xff]  ;;  %v207_v13 = vld [vmem:[#allocation5 + $0xe0] sm:$0xff]  ;;  %s1326_s13 = smov [#allocation7]  }
  0x4d   : > { %941 = vmatprep.subr.mxu0 %v192_v2  ;;  %994 = vmatpush3.msra.mxu1 %v210_v8  ;;  %v185_v14 = vld [vmem:[#allocation5 + $0x30] sm:$0xff]  ;;  %v206_v15 = vld [vmem:[#allocation5 + $0xd8] sm:$0xff]  ;;  %v184_v16 = vld [vmem:[#allocation5 + $0x28] sm:$0xff]  ;;  %p1254_p7 = pnand %p1253_p3, %p1622_p11  ;;  %s1256_s27 = sshll.u32 %s1326_s13, 4  ;;  %s1257_s27 = int_to_ptr.vmem [resolvable:$false] %s1256_s27 }
  0x4e   : > { %942 = vmatpush3.msra.mxu0 %v192_v2  ;;  %995 = vmatprep.subr.mxu1 %v209_v9  ;;  %v205_v17 = vld [vmem:[#allocation5 + $0xd0] sm:$0xff]  ;;  %v183_v18 = vld [vmem:[#allocation5 + $0x20] sm:$0xff]  ;;  %v204_v19 = vld [vmem:[#allocation5 + $0xc8] sm:$0xff]  ;;  %s1258_s28 = scalar_lea.vmem %s1257_s27, 4096  ;;  %p1259_p10 = scmp.lt.s32.totalorder %s1559_s25, %s1257_s27 }
  0x4f   : > { %943 = vmatprep.subr.mxu0 %v191_v3  ;;  %996 = vmatpush3.msra.mxu1 %v209_v9  ;;  %v182_v20 = vld [vmem:[#allocation5 + $0x18] sm:$0xff]  ;;  %v203_v21 = vld [vmem:[#allocation5 + $0xc0] sm:$0xff]  ;;  %v181_v22 = vld [vmem:[#allocation5 + $0x10] sm:$0xff]  ;;  %p1255_p9 = pneg %p1254_p7  ;;  %p1260_p12 = scmp.lt.s32.totalorder %s1258_s28, %s1252_s24 }
  0x50   : > { %944 = vmatpush3.msra.mxu0 %v191_v3  ;;  %997 = vmatprep.subr.mxu1 %v208_v11  ;;  %v202_v23 = vld [vmem:[#allocation5 + $0xb8] sm:$0xff]  ;;  %v180_v24 = vld [vmem:[#allocation5 + $0x8] sm:$0xff]  ;;  %v201_v25 = vld [vmem:[#allocation5 + $0xb0] sm:$0xff] }
  0x51   : > { %945 = vmatprep.subr.mxu0 %v190_v5  ;;  %998 = vmatpush3.msra.mxu1 %v208_v11  ;;  %v179_v26 = vld [vmem:[#allocation5] sm:$0xff]  ;;  %v200_v27 = vld [vmem:[#allocation5 + $0xa8] sm:$0xff]  ;;  %v229_v30 = vld [vmem:[%s1472_s19 + $0x10] sm:$0xff]  ;;  %p1261_p13 = por %p1260_p12, %p1259_p10 }
  0x52   : > { %946 = vmatpush3.msra.mxu0 %v190_v5  ;;  %999 = vmatprep.subr.mxu1 %v207_v13  ;;  %v228_v28 = vld [vmem:[%s1472_s19 + $0x8] sm:$0xff]  ;;  %v199_v29 = vld [vmem:[#allocation5 + $0xa0] sm:$0xff]  ;;  %v198_v31 = vld [vmem:[#allocation5 + $0x98] sm:$0xff] }
  0x53   : > { %947 = vmatprep.subr.mxu0 %v189_v6  ;;  %1000 = vmatpush3.msra.mxu1 %v207_v13  ;;  %v230_v32 = vld [vmem:[%s1472_s19 + $0x18] sm:$0xff]  ;;  %v231_v33 = vld [vmem:[%s1472_s19 + $0x20] sm:$0xff]  ;;  %v232_v34 = vld [vmem:[%s1472_s19 + $0x28] sm:$0xff]  ;;  %p1262_p0 = pnand %p1261_p13, %p1255_p9 }
  0x54   : > { %948 = vmatpush3.msra.mxu0 %v189_v6  ;;  %1001 = vmatprep.subr.mxu1 %v206_v15  ;;  %v233_v35 = vld [vmem:[%s1472_s19 + $0x30] sm:$0xff]  ;;  %v234_v36 = vld [vmem:[%s1472_s19 + $0x38] sm:$0xff]  ;;  %v235_v37 = vld [vmem:[%s1472_s19 + $0x40] sm:$0xff] }
  0x55   : > { %949 = vmatprep.subr.mxu0 %v188_v7  ;;  %1002 = vmatpush3.msra.mxu1 %v206_v15  ;;  %v236_v38 = vld [vmem:[%s1472_s19 + $0x48] sm:$0xff]  ;;  %v237_v39 = vld [vmem:[%s1472_s19 + $0x50] sm:$0xff]  ;;  %v238_v40 = vld [vmem:[%s1472_s19 + $0x58] sm:$0xff] }
  0x56   : > { %950 = vmatpush3.msra.mxu0 %v188_v7  ;;  %1003 = vmatprep.subr.mxu1 %v205_v17  ;;  %v239_v41 = vld [vmem:[%s1472_s19 + $0x60] sm:$0xff]  ;;  %v240_v42 = vld [vmem:[%s1472_s19 + $0x68] sm:$0xff]  ;;  %v241_v43 = vld [vmem:[%s1472_s19 + $0x70] sm:$0xff] }
  0x57   : > { %951 = vmatprep.subr.mxu0 %v187_v10  ;;  %1004 = vmatpush3.msra.mxu1 %v205_v17  ;;  %v242_v44 = vld [vmem:[%s1472_s19 + $0x78] sm:$0xff]  ;;  %v197_v45 = vld [vmem:[#allocation5 + $0x90] sm:$0xff]  ;;  %v196_v46 = vld [vmem:[#allocation5 + $0x88] sm:$0xff] }
  0x58   : > { %952 = vmatpush3.msra.mxu0 %v187_v10  ;;  %1005 = vmatprep.subr.mxu1 %v204_v19  ;;  %v195_v47 = vld [vmem:[#allocation5 + $0x80] sm:$0xff]  ;;  %v226_v48 = vld [vmem:[#allocation5 + $0x178] sm:$0xff]  ;;  %v225_v49 = vld [vmem:[#allocation5 + $0x170] sm:$0xff] }
  0x59   : > { %953 = vmatprep.subr.mxu0 %v186_v12  ;;  %1006 = vmatpush3.msra.mxu1 %v204_v19  ;;  %v224_v50 = vld [vmem:[#allocation5 + $0x168] sm:$0xff]  ;;  %v223_v51 = vld [vmem:[#allocation5 + $0x160] sm:$0xff]  ;;  %v222_v52 = vld [vmem:[#allocation5 + $0x158] sm:$0xff] }
  0x5a   : > { %954 = vmatpush3.msra.mxu0 %v186_v12  ;;  %1007 = vmatprep.subr.mxu1 %v203_v21  ;;  %v221_v53 = vld [vmem:[#allocation5 + $0x150] sm:$0xff]  ;;  %v220_v54 = vld [vmem:[#allocation5 + $0x148] sm:$0xff]  ;;  %v1498_v55 = vld [vmem:[#allocation5 + $0x140] sm:$0xff] }
  0x5b   : > { %955 = vmatprep.subr.mxu0 %v185_v14  ;;  %1008 = vmatpush3.msra.mxu1 %v203_v21  ;;  %v1500_v56 = vld [vmem:[#allocation5 + $0x138] sm:$0xff]  ;;  %v1504_v57 = vld [vmem:[#allocation5 + $0x130] sm:$0xff]  ;;  %v1508_v58 = vld [vmem:[#allocation5 + $0x128] sm:$0xff] }
  0x5c   : > { %956 = vmatpush3.msra.mxu0 %v185_v14  ;;  %1009 = vmatprep.subr.mxu1 %v202_v23  ;;  %v1512_v59 = vld [vmem:[#allocation5 + $0x120] sm:$0xff]  ;;  %v1516_v60 = vld [vmem:[#allocation5 + $0x118] sm:$0xff] }
  0x5d   : > { %957 = vmatprep.subr.mxu0 %v184_v16  ;;  %1010 = vmatpush3.msra.mxu1 %v202_v23 }
  0x5e   : > { %958 = vmatpush3.msra.mxu0 %v184_v16  ;;  %1011 = vmatprep.subr.mxu1 %v201_v25 }
  0x5f   : > { %959 = vmatprep.subr.mxu0 %v183_v18  ;;  %1012 = vmatpush3.msra.mxu1 %v201_v25 }
  0x60   : > { %960 = vmatpush3.msra.mxu0 %v183_v18  ;;  %1013 = vmatprep.subr.mxu1 %v200_v27 }
  0x61   : > { %961 = vmatprep.subr.mxu0 %v182_v20  ;;  %1014 = vmatpush3.msra.mxu1 %v200_v27 }
  0x62   : > { %962 = vmatpush3.msra.mxu0 %v182_v20  ;;  %1015 = vmatprep.subr.mxu1 %v199_v29 }
  0x63   : > { %963 = vmatprep.subr.mxu0 %v181_v22  ;;  %1016 = vmatpush3.msra.mxu1 %v199_v29  ;;  %v213_v29 = vld [vmem:[#allocation5 + $0x110] sm:$0xff] }
  0x64   : > { %964 = vmatpush3.msra.mxu0 %v181_v22  ;;  %1017 = vmatprep.subr.mxu1 %v198_v31 }
  0x65   : > { %965 = vmatprep.subr.mxu0 %v180_v24  ;;  %1018 = vmatpush3.msra.mxu1 %v198_v31  ;;  %v211_v31 = vld [vmem:[#allocation5 + $0x100] sm:$0xff] }
  0x66   : > { %966 = vmatpush3.msra.mxu0 %v180_v24  ;;  %1019 = vmatprep.subr.mxu1 %v197_v45 }
  0x67   : > { %967 = vmatprep.subr.mxu0 %v179_v26  ;;  %1020 = vmatpush3.msra.mxu1 %v197_v45 }
  0x68   : > { %968 = vmatpush3.msra.mxu0 %v179_v26  ;;  %1021 = vmatprep.subr.mxu1 %v196_v46 }
  0x69   : > { %970 = vmatmul.mubr.f32.vlgmr.msra.gmra.mxu0 %v228_v28  ;;  %1022 = vmatpush3.msra.mxu1 %v196_v46 }
  0x6a   : > { %972 = vmatprep.mubr.f32.mxu0 %v229_v30  ;;  %1023 = vmatprep.subr.mxu1 %v195_v47  ;;  %v212_v30 = vld [vmem:[#allocation5 + $0x108] sm:$0xff] }
  0x6b   : > { %1024 = vmatpush3.msra.mxu1 %v195_v47  ;;  %1049 = vmatprep.subr.mxu0 %v226_v48 }
  0x6c   : > { %1105 = vmatprep.subr.mxu1 %v226_v48  ;;  %1050 = vmatpush3.msra.mxu0 %v226_v48 }
  0x6d   : > { %973 = vmatmul.mubr.f32.gmra.mxu0 %v230_v32  ;;  %1051 = vmatprep.subr.mxu0 %v225_v49 }
  0x6e   : > { %975 = vmatprep.mubr.f32.mxu0 %v231_v33  ;;  %1052 = vmatpush3.msra.mxu0 %v225_v49 }
  0x6f   : > { %1053 = vmatprep.subr.mxu0 %v224_v50 }
  0x70   : > { %1054 = vmatpush3.msra.mxu0 %v224_v50 }
  0x71   : > { %976 = vmatmul.mubr.f32.gmra.mxu0 %v232_v34  ;;  %1055 = vmatprep.subr.mxu0 %v223_v51 }
  0x72   : > { %978 = vmatprep.mubr.f32.mxu0 %v233_v35  ;;  %1056 = vmatpush3.msra.mxu0 %v223_v51 }
  0x73   : > { %1057 = vmatprep.subr.mxu0 %v222_v52 }
  0x74   : > { %1058 = vmatpush3.msra.mxu0 %v222_v52 }
  0x75   : > { %979 = vmatmul.mubr.f32.gmra.mxu0 %v234_v36  ;;  %1059 = vmatprep.subr.mxu0 %v221_v53 }
  0x76   : > { %981 = vmatprep.mubr.f32.mxu0 %v235_v37  ;;  %1060 = vmatpush3.msra.mxu0 %v221_v53 }
  0x77   : > { %1061 = vmatprep.subr.mxu0 %v220_v54 }
  0x78   : > { %1062 = vmatpush3.msra.mxu0 %v220_v54 }
  0x79   : > { %982 = vmatmul.mubr.f32.gmra.mxu0 %v236_v38  ;;  %1063 = vmatprep.subr.mxu0 %v1498_v55 }
  0x7a   : > { %984 = vmatprep.mubr.f32.mxu0 %v237_v39  ;;  %1064 = vmatpush3.msra.mxu0 %v1498_v55 }
  0x7b   : > { %1065 = vmatprep.subr.mxu0 %v1500_v56 }
  0x7c   : > { %1066 = vmatpush3.msra.mxu0 %v1500_v56 }
  0x7d   : > { %985 = vmatmul.mubr.f32.gmra.mxu0 %v238_v40  ;;  %1067 = vmatprep.subr.mxu0 %v1504_v57 }
  0x7e   : > { %987 = vmatprep.mubr.f32.mxu0 %v239_v41  ;;  %1068 = vmatpush3.msra.mxu0 %v1504_v57 }
  0x7f   : > { %1069 = vmatprep.subr.mxu0 %v1508_v58 }
  0x80   : > { %1070 = vmatpush3.msra.mxu0 %v1508_v58 }
  0x81   : > { %988 = vmatmul.mubr.f32.gmra.mxu0 %v240_v42  ;;  %1071 = vmatprep.subr.mxu0 %v1512_v59 }
  0x82   : > { %990 = vmatprep.mubr.f32.mxu0 %v241_v43  ;;  %1072 = vmatpush3.msra.mxu0 %v1512_v59 }
  0x83   : > { %1073 = vmatprep.subr.mxu0 %v1516_v60 }
  0x84   : > { %1074 = vmatpush3.msra.mxu0 %v1516_v60 }
  0x85   : > { %991 = vmatmul.mubr.f32.gmra.mxu0 %v242_v44  ;;  %1075 = vmatprep.subr.mxu0 %v213_v29 }
  0x86   : > { %1076 = vmatpush3.msra.mxu0 %v213_v29 }
  0x87   : > { %1077 = vmatprep.subr.mxu0 %v212_v30 }
  0x88   : > { %1078 = vmatpush3.msra.mxu0 %v212_v30 }
  0x89   : > { %1079 = vmatprep.subr.mxu0 %v211_v31 }
  0x8a   : > { %1080 = vmatpush3.msra.mxu0 %v211_v31 }
 0x129   : > { %v971_v61 = vpop.f32.mrf.mxu0 }
 0x12a   : > { %v389_v0 = vmax.f32 %v971_v61, 0.0 }
 0x12b   : > { %v309_v62 = vpop.f32.mrf.mxu0 }
 0x12c   : > { %v388_v63 = vmax.f32 %v309_v62, 0.0 }
 0x12d   : > { %v974_v1 = vpop.f32.mrf.mxu0 }
 0x12e   : > { %1025 = vmatprep.mubr.f32.mxu1 %v388_v63  ;;  %v391_v4 = vmax.f32 %v974_v1, 0.0 }
 0x12f   : > { %v319_v2 = vpop.f32.mrf.mxu0  ;;  %1026 = vmatmul.mubr.f32.vlgmr.msra.gmra.mxu1 %v389_v0 }
 0x130   : > { %v390_v3 = vmax.f32 %v319_v2, 0.0  ;;  %1121 = vmatpush3.msra.mxu1 %v226_v48 }
 0x131   : > { %v977_v5 = vpop.f32.mrf.mxu0  ;;  %1106 = vmatprep.subr.mxu1 %v225_v49 }
 0x132   : > { %1028 = vmatprep.mubr.f32.mxu1 %v390_v3  ;;  %1122 = vmatpush3.msra.mxu1 %v225_v49  ;;  %v393_v8 = vmax.f32 %v977_v5, 0.0 }
 0x133   : > { %v329_v6 = vpop.f32.mrf.mxu0  ;;  %1029 = vmatmul.mubr.f32.gmra.mxu1 %v391_v4  ;;  %1107 = vmatprep.subr.mxu1 %v224_v50 }
 0x134   : > { %v392_v7 = vmax.f32 %v329_v6, 0.0  ;;  %1123 = vmatpush3.msra.mxu1 %v224_v50 }
 0x135   : > { %v980_v9 = vpop.f32.mrf.mxu0  ;;  %1108 = vmatprep.subr.mxu1 %v223_v51 }
 0x136   : > { %1031 = vmatprep.mubr.f32.mxu1 %v392_v7  ;;  %1124 = vmatpush3.msra.mxu1 %v223_v51  ;;  %v395_v12 = vmax.f32 %v980_v9, 0.0 }
 0x137   : > { %v339_v10 = vpop.f32.mrf.mxu0  ;;  %1032 = vmatmul.mubr.f32.gmra.mxu1 %v393_v8  ;;  %1109 = vmatprep.subr.mxu1 %v222_v52 }
 0x138   : > { %v394_v11 = vmax.f32 %v339_v10, 0.0  ;;  %1125 = vmatpush3.msra.mxu1 %v222_v52 }
 0x139   : > { %v983_v13 = vpop.f32.mrf.mxu0  ;;  %1110 = vmatprep.subr.mxu1 %v221_v53 }
 0x13a   : > { %1034 = vmatprep.mubr.f32.mxu1 %v394_v11  ;;  %1126 = vmatpush3.msra.mxu1 %v221_v53  ;;  %v397_v16 = vmax.f32 %v983_v13, 0.0 }
 0x13b   : > { %v349_v14 = vpop.f32.mrf.mxu0  ;;  %1035 = vmatmul.mubr.f32.gmra.mxu1 %v395_v12  ;;  %1111 = vmatprep.subr.mxu1 %v220_v54 }
 0x13c   : > { %v396_v15 = vmax.f32 %v349_v14, 0.0  ;;  %1127 = vmatpush3.msra.mxu1 %v220_v54 }
 0x13d   : > { %v986_v17 = vpop.f32.mrf.mxu0  ;;  %1112 = vmatprep.subr.mxu1 %v1498_v55 }
 0x13e   : > { %1037 = vmatprep.mubr.f32.mxu1 %v396_v15  ;;  %1128 = vmatpush3.msra.mxu1 %v1498_v55  ;;  %v399_v20 = vmax.f32 %v986_v17, 0.0 }
 0x13f   : > { %v359_v18 = vpop.f32.mrf.mxu0  ;;  %1038 = vmatmul.mubr.f32.gmra.mxu1 %v397_v16  ;;  %1113 = vmatprep.subr.mxu1 %v1500_v56 }
 0x140   : > { %v398_v19 = vmax.f32 %v359_v18, 0.0  ;;  %1129 = vmatpush3.msra.mxu1 %v1500_v56 }
 0x141   : > { %v989_v21 = vpop.f32.mrf.mxu0  ;;  %1114 = vmatprep.subr.mxu1 %v1504_v57 }
 0x142   : > { %1040 = vmatprep.mubr.f32.mxu1 %v398_v19  ;;  %1130 = vmatpush3.msra.mxu1 %v1504_v57  ;;  %v401_v24 = vmax.f32 %v989_v21, 0.0 }
 0x143   : > { %v369_v22 = vpop.f32.mrf.mxu0  ;;  %1041 = vmatmul.mubr.f32.gmra.mxu1 %v399_v20  ;;  %1115 = vmatprep.subr.mxu1 %v1508_v58 }
 0x144   : > { %v400_v23 = vmax.f32 %v369_v22, 0.0  ;;  %1131 = vmatpush3.msra.mxu1 %v1508_v58 }
 0x145   : > { %v992_v25 = vpop.f32.mrf.mxu0  ;;  %1116 = vmatprep.subr.mxu1 %v1512_v59 }
 0x146   : > { %1043 = vmatprep.mubr.f32.mxu1 %v400_v23  ;;  %1132 = vmatpush3.msra.mxu1 %v1512_v59  ;;  %v403_v28 = vmax.f32 %v992_v25, 0.0 }
 0x147   : > { %v379_v26 = vpop.f32.mrf.mxu0  ;;  %1044 = vmatmul.mubr.f32.gmra.mxu1 %v401_v24  ;;  %1117 = vmatprep.subr.mxu1 %v1516_v60 }
 0x148   : > { %v402_v27 = vmax.f32 %v379_v26, 0.0  ;;  %1133 = vmatpush3.msra.mxu1 %v1516_v60 }
 0x149   : > { %1118 = vmatprep.subr.mxu1 %v213_v29 }
 0x14a   : > { %1046 = vmatprep.mubr.f32.mxu1 %v402_v27  ;;  %1134 = vmatpush3.msra.mxu1 %v213_v29 }
 0x14b   : > { %1047 = vmatmul.mubr.f32.gmra.mxu1 %v403_v28  ;;  %1119 = vmatprep.subr.mxu1 %v212_v30 }
 0x14c   : > { %1135 = vmatpush3.msra.mxu1 %v212_v30 }
 0x14d   : > { %1120 = vmatprep.subr.mxu1 %v211_v31 }
 0x14e   : > { %1136 = vmatpush3.msra.mxu1 %v211_v31 }
 0x1ef   : > { %v1027_v32 = vpop.f32.mrf.mxu1 }
 0x1f0   : > { %v550_v35 = vmax.f32 %v1027_v32, 0.0 }
 0x1f1   : > { %v470_v33 = vpop.f32.mrf.mxu1 }
 0x1f2   : > { %v549_v34 = vmax.f32 %v470_v33, 0.0 }
 0x1f3   : > { %v1030_v36 = vpop.f32.mrf.mxu1 }
 0x1f4   : > { %1081 = vmatprep.mubr.f32.mxu0 %v549_v34  ;;  %v552_v39 = vmax.f32 %v1030_v36, 0.0 }
 0x1f5   : > { %v480_v37 = vpop.f32.mrf.mxu1  ;;  %1082 = vmatmul.mubr.f32.vlgmr.msra.gmra.mxu0 %v550_v35 }
 0x1f6   : > { %v551_v38 = vmax.f32 %v480_v37, 0.0 }
 0x1f7   : > { %v1033_v40 = vpop.f32.mrf.mxu1 }
 0x1f8   : > { %1084 = vmatprep.mubr.f32.mxu0 %v551_v38  ;;  %v554_v43 = vmax.f32 %v1033_v40, 0.0 }
 0x1f9   : > { %v490_v41 = vpop.f32.mrf.mxu1  ;;  %1085 = vmatmul.mubr.f32.gmra.mxu0 %v552_v39 }
 0x1fa   : > { %v553_v42 = vmax.f32 %v490_v41, 0.0 }
 0x1fb   : > { %v1036_v44 = vpop.f32.mrf.mxu1 }
 0x1fc   : > { %1087 = vmatprep.mubr.f32.mxu0 %v553_v42  ;;  %v556_v47 = vmax.f32 %v1036_v44, 0.0 }
 0x1fd   : > { %v500_v45 = vpop.f32.mrf.mxu1  ;;  %1088 = vmatmul.mubr.f32.gmra.mxu0 %v554_v43 }
 0x1fe   : > { %v555_v46 = vmax.f32 %v500_v45, 0.0 }
 0x1ff   : > { %v1039_v48 = vpop.f32.mrf.mxu1 }
 0x200   : > { %1090 = vmatprep.mubr.f32.mxu0 %v555_v46  ;;  %v558_v51 = vmax.f32 %v1039_v48, 0.0 }
 0x201   : > { %v510_v49 = vpop.f32.mrf.mxu1  ;;  %1091 = vmatmul.mubr.f32.gmra.mxu0 %v556_v47 }
 0x202   : > { %v557_v50 = vmax.f32 %v510_v49, 0.0 }
 0x203   : > { %v1042_v52 = vpop.f32.mrf.mxu1 }
 0x204   : > { %1093 = vmatprep.mubr.f32.mxu1 %v557_v50  ;;  %v560_v55 = vmax.f32 %v1042_v52, 0.0 }
 0x205   : > { %v520_v53 = vpop.f32.mrf.mxu1  ;;  %1094 = vmatmul.mubr.f32.vlgmr.msra.gmra.mxu1 %v558_v51 }
 0x206   : > { %v559_v54 = vmax.f32 %v520_v53, 0.0 }
 0x207   : > { %v1045_v56 = vpop.f32.mrf.mxu1 }
 0x208   : > { %1096 = vmatprep.mubr.f32.mxu1 %v559_v54  ;;  %v562_v59 = vmax.f32 %v1045_v56, 0.0 }
 0x209   : > { %v530_v57 = vpop.f32.mrf.mxu1  ;;  %1097 = vmatmul.mubr.f32.gmra.mxu1 %v560_v55 }
 0x20a   : > { %v561_v58 = vmax.f32 %v530_v57, 0.0 }
 0x20b   : > { %v1048_v60 = vpop.f32.mrf.mxu1 }
 0x20c   : > { %1099 = vmatprep.mubr.f32.mxu1 %v561_v58  ;;  %v564_v63 = vmax.f32 %v1048_v60, 0.0 }
 0x20d   : > { %v540_v61 = vpop.f32.mrf.mxu1  ;;  %1100 = vmatmul.mubr.f32.gmra.mxu1 %v562_v59 }
 0x20e   : > { %v563_v62 = vmax.f32 %v540_v61, 0.0 }
 0x210   : > { %1102 = vmatprep.mubr.f32.mxu1 %v563_v62 }
 0x211   : > { %1103 = vmatmul.mubr.f32.gmra.mxu1 %v564_v63 }
 0x2b5   : > { %v1083_v0 = vpop.f32.mrf.mxu0 }
 0x2b6   : > { %711 = vst [vmem:[%s1536_s15 + $0x8] sm:$0xff] %v1083_v0 }
 0x2b7   : > { %v631_v1 = vpop.f32.mrf.mxu0 }
 0x2b8   : > { %710 = vst [vmem:[%s1536_s15] sm:$0xff] %v631_v1 }
 0x2b9   : > { %v1086_v2 = vpop.f32.mrf.mxu0 }
 0x2ba   : > { %713 = vst [vmem:[%s1536_s15 + $0x18] sm:$0xff] %v1086_v2 }
 0x2bb   : > { %v641_v3 = vpop.f32.mrf.mxu0 }
 0x2bc   : > { %712 = vst [vmem:[%s1536_s15 + $0x10] sm:$0xff] %v641_v3 }
 0x2bd   : > { %v1089_v4 = vpop.f32.mrf.mxu0 }
 0x2be   : > { %715 = vst [vmem:[%s1536_s15 + $0x28] sm:$0xff] %v1089_v4 }
 0x2bf   : > { %v651_v5 = vpop.f32.mrf.mxu0 }
 0x2c0   : > { %714 = vst [vmem:[%s1536_s15 + $0x20] sm:$0xff] %v651_v5 }
 0x2c1   : > { %v1092_v6 = vpop.f32.mrf.mxu0 }
 0x2c2   : > { %717 = vst [vmem:[%s1536_s15 + $0x38] sm:$0xff] %v1092_v6 }
 0x2c3   : > { %v661_v7 = vpop.f32.mrf.mxu0 }
 0x2c4   : > { %716 = vst [vmem:[%s1536_s15 + $0x30] sm:$0xff] %v661_v7 }
 0x2c5   : > { %v1095_v8 = vpop.f32.mrf.mxu1 }
 0x2c6   : > { %719 = vst [vmem:[%s1536_s15 + $0x48] sm:$0xff] %v1095_v8 }
 0x2c7   : > { %v671_v9 = vpop.f32.mrf.mxu1 }
 0x2c8   : > { %718 = vst [vmem:[%s1536_s15 + $0x40] sm:$0xff] %v671_v9 }
 0x2c9   : > { %v1098_v10 = vpop.f32.mrf.mxu1 }
 0x2ca   : > { %721 = vst [vmem:[%s1536_s15 + $0x58] sm:$0xff] %v1098_v10 }
 0x2cb   : > { %v681_v11 = vpop.f32.mrf.mxu1 }
 0x2cc   : > { %720 = vst [vmem:[%s1536_s15 + $0x50] sm:$0xff] %v681_v11 }
 0x2cd   : > { %v1101_v12 = vpop.f32.mrf.mxu1 }
 0x2ce   : > { %723 = vst [vmem:[%s1536_s15 + $0x68] sm:$0xff] %v1101_v12 }
 0x2cf   : > { %v691_v13 = vpop.f32.mrf.mxu1 }
 0x2d0   : > { %722 = vst [vmem:[%s1536_s15 + $0x60] sm:$0xff] %v691_v13 }
 0x2d1   : > { %v1104_v14 = vpop.f32.mrf.mxu1 }
 0x2d2   : > { %725 = vst [vmem:[%s1536_s15 + $0x78] sm:$0xff] %v1104_v14 }
 0x2d3   : > { %v701_v15 = vpop.f32.mrf.mxu1 }
 0x2d4   : > { %724 = vst [vmem:[%s1536_s15 + $0x70] sm:$0xff] %v701_v15 }
 0x2d5   : > { %1265 = shalt.err (!%p1262_p0)
}
 0x2d6   : > { %s1266_s4 = scalar_lea.hbm %s1557_s18, 2048  ;;  %s1270_s6 = scalar_lea.hbm %s1606_s2, 4096 }
 0x2d7   : > { %p1267_p5 = scmp.ne.s32.totalorder %s1557_s18, %s1266_s4  ;;  %p1271_p4 = scmp.lt.s32.totalorder %s1557_s18, %s1606_s2 }
 0x2d8   : > { %p1272_p6 = scmp.lt.s32.totalorder %s1270_s6, %s1266_s4 }
 0x2d9   : > { %p1268_p2 = pnand %p1267_p5, %p1622_p11 }
 0x2da   : > { %p1273_p8 = por %p1272_p6, %p1271_p4 }
 0x2db   : > { %p1269_p1 = pneg %p1268_p2 }
 0x2dd   : > { %p1274_p3 = pnand %p1273_p8, %p1269_p1 }
 0x2df   : > { %1277 = shalt.err (!%p1274_p3)
}
 0x2e0   : > { %s1327_s23 = smov 128   ;;  %s1328_s19 = smov 8  }
 0x2e1   : > { %1143 = dma.vmem_to_hbm [thread:$0]  (%p1622_p11), %s1559_s25, 2048, %s1557_s18, %s727_s20, %s1327_s23, %s1327_s23, %s1328_s19  }
 0x2e2 PF: > { %s755_s15 = sand.u32 1, %s1308_s9   ;;  %p1623_p7 = scmp.ne.s32.totalorder %s1612_s16, 0 }
 0x2e3   : > { %p1624_p9 = scmp.ge.s32.totalorder %s1320_s12, 2  ;;  %s756_s17 = scalar_lea.sflag [#allocation4], %s755_s15 }
 0x2e5   : > { %p1154_p10 = pnand %p1624_p9, %p1623_p7 }
 0x2e7   : > { %p1155_p12 = pneg %p1154_p10 }
 0x2e9   : > { %1303 = dma.done.wait (%p1155_p12), %s756_s17, 2048  }
 0x2ea   : > { %1305 = vsyncadd (%p1155_p12), %s756_s17, 4294965248  ;;  %p16_p13 = scmp.ge.s32.totalorder %s1398_s21, 4   ;;  %s1625_s9 = smov %s1312_s10 }
 0x2eb   : > { %s1626_s10 = smov %s1316_s11  ;;  %s1627_s11 = smov %s1418_s29 }
 0x2ec   : > { %s1628_s12 = smov %s1398_s21  ;;  %18 = sbr.rel (!%p16_p13) target bundleno = 6 (0x6), region = 77 }
 0x2f1   :  { %761 = vsyncpa [#allocation3], 1 }
 0x2f2   :  { %763 = vsyncpa [#allocation3 + $0x1], 1 }
 0x2f3   :  { %764 = vsyncpa [#allocation6], 1 }
 0x2f4   :  { %765 = vsyncpa [#allocation4], 1 }
 0x2f5   :  { %767 = vsyncpa [#allocation4 + $0x1], 1 }

</bundles_post_ra>
